<compile_context>
chip_gen: v5e
topology: v5e:2x2
jax: 0.10.0
libtpu: 0.0.40
codegen_flags: <defaults>
</compile_context>

<pallas_src>
import functools

import jax
import jax.numpy as jnp
from jax.experimental import pallas as pl
from jax.experimental.pallas import tpu as pltpu


def _time_mask_kernel(start_ref, end_ref, x_ref, o_ref):
    # start_ref / end_ref: (Bt, 1) int32 VMEM blocks with flat [start, end) bounds.
    # x_ref / o_ref:       (Bt, Nt) VMEM tiles of the lane-dense flattened input.
    col0 = pl.program_id(1) * x_ref.shape[1]
    # Global flat index within each batch row, for every element of the block.
    lin = col0 + jax.lax.broadcasted_iota(jnp.int32, x_ref.shape, dimension=1)
    keep = jnp.logical_or(lin < start_ref[...], lin >= end_ref[...])
    o_ref[...] = jnp.where(keep, x_ref[...], jnp.zeros_like(x_ref[...]))


def _choose_tiles(bsz, n_flat, itemsize):
    """Pick (Bt, Nt) block shape: ~1 MiB per buffer, (8,128)-or-full-dim legal."""
    target = 1 << 20  # 1 MiB per block; x2 (in+out) x2 (double buffer) ~ 4 MiB live
    # Column (lane) chunk: full row unless a single row is too large; chunks must
    # be multiples of 128 (or equal to the full dim).
    if n_flat * itemsize <= target or n_flat % 128 != 0:
        nt = n_flat
    else:
        nt = max(128, min(n_flat, (target // itemsize) // 128 * 128))
    # Row (sublane) block: as many batch rows as fit; multiple of 8 or equal bsz.
    rows = max(1, target // (nt * itemsize))
    if rows >= bsz:
        bt = bsz
    else:
        bt = max(8, (rows // 8) * 8)
        if bt >= bsz:
            bt = bsz
    return bt, nt


def _sample_mask_bounds(key, bsz, num_samples, min_mask_length, max_mask_length, prob):
    """Per-batch-element [start, end) in *time* units; end == start for unselected."""
    k_prob, k_start, k_len = jax.random.split(key, 3)
    selected = jax.random.uniform(k_prob, (bsz,)) < prob
    start_hi = max(num_samples - max_mask_length, 1)  # guard randint(0, 0)
    start = jax.random.randint(k_start, (bsz,), 0, start_hi, dtype=jnp.int32)
    if max_mask_length > min_mask_length:
        length = jax.random.randint(
            k_len, (bsz,), min_mask_length, max_mask_length, dtype=jnp.int32
        )
    else:  # degenerate range: fixed length (torch.randint would error here)
        length = jnp.full((bsz,), min_mask_length, dtype=jnp.int32)
    end = start + length
    end = jnp.where(selected, end, start).astype(jnp.int32)
    return start, end


@functools.partial(
    jax.jit, static_argnames=("min_mask_length", "max_mask_length", "prob")
)
def time_mask(x, key, *, min_mask_length=0, max_mask_length=0, prob=0.5):
    """JAX/Pallas equivalent of TimeMask.forward.

    x: array of shape (*batch, num_samples, num_channels) (2-D also accepted).
    Returns a new array (JAX is functional; no in-place mutation) where, for each
    flattened batch element selected with probability `prob`, a random time span
    [start, start+len) is zeroed across all channels.
    """
    squeeze_2d = x.ndim == 2
    if squeeze_2d:
        x = x[None]

    bshape = x.shape[:-2]
    num_samples, num_channels = x.shape[-2:]

    # Guaranteed no-op: skip the kernel entirely (no HBM read+write).
    if max_mask_length <= 0 or prob <= 0.0:
        return x[0] if squeeze_2d else x

    n_flat = num_samples * num_channels
    xb = x.reshape(-1, n_flat)  # lane-dense flat layout; contiguous => free
    bsz = xb.shape[0]

    start_t, end_t = _sample_mask_bounds(
        key, bsz, num_samples, min_mask_length, max_mask_length, prob
    )
    # Scale bounds to the flat index space: time step t occupies flat indices
    # [t*C, (t+1)*C), so masking [start, end) in time == [start*C, end*C) flat.
    start_flat = (start_t * num_channels).astype(jnp.int32).reshape(bsz, 1)
    end_flat = (end_t * num_channels).astype(jnp.int32).reshape(bsz, 1)

    bt, nt = _choose_tiles(bsz, n_flat, xb.dtype.itemsize)
    grid = (pl.cdiv(bsz, bt), pl.cdiv(n_flat, nt))

    out = pl.pallas_call(
        _time_mask_kernel,
        out_shape=jax.ShapeDtypeStruct(xb.shape, xb.dtype),
        grid=grid,
        in_specs=[
            pl.BlockSpec((bt, 1), lambda i, j: (i, 0)),
            pl.BlockSpec((bt, 1), lambda i, j: (i, 0)),
            pl.BlockSpec((bt, nt), lambda i, j: (i, j)),
        ],
        out_specs=pl.BlockSpec((bt, nt), lambda i, j: (i, j)),
        compiler_params=pltpu.CompilerParams(
            # Embarrassingly parallel; lets v7x shard blocks across its 2 TCs.
            dimension_semantics=("parallel", "parallel"),
        ),
    )(start_flat, end_flat, xb)

    out = out.reshape(*bshape, num_samples, num_channels)
    return out[0] if squeeze_2d else out


def _time_mask_reference(x, key, *, min_mask_length, max_mask_length, prob):
    """Pure-JAX reference (identical RNG consumption as time_mask)."""
    if x.ndim == 2:
        return _time_mask_reference(
            x[None], key, min_mask_length=min_mask_length,
            max_mask_length=max_mask_length, prob=prob,
        )[0]
    num_samples, num_channels = x.shape[-2:]
    if max_mask_length <= 0 or prob <= 0.0:
        return x
    xb = x.reshape(-1, num_samples, num_channels)
    bsz = xb.shape[0]
    start, end = _sample_mask_bounds(
        key, bsz, num_samples, min_mask_length, max_mask_length, prob
    )
    t = jnp.arange(num_samples, dtype=jnp.int32)[None, :, None]
    keep = jnp.logical_or(t < start[:, None, None], t >= end[:, None, None])
    return jnp.where(keep, xb, jnp.zeros_like(xb)).reshape(x.shape)


if __name__ == "__main__":
    key = jax.random.PRNGKey(0)
    k_data1, k_mask1, k_data2, k_mask2 = jax.random.split(key, 4)

    # --- Small case: (*batch, num_samples, num_channels) = (2, 3, 16, 4) -----
    x1 = jax.random.normal(k_data1, (2, 3, 16, 4), dtype=jnp.float32)
    y1 = time_mask(x1, k_mask1, min_mask_length=2, max_mask_length=6, prob=0.5)
    y1 = jax.block_until_ready(y1)
    assert y1.shape == x1.shape and y1.dtype == x1.dtype
    y1_ref = _time_mask_reference(
        x1, k_mask1, min_mask_length=2, max_mask_length=6, prob=0.5
    )
    assert bool(jnp.array_equal(y1, y1_ref))
    assert bool(jnp.all(jnp.logical_or(y1 == x1, y1 == 0.0)))

    # --- Larger case exercising multi-block grid + ragged batch edge ---------
    x2 = jax.random.normal(k_data2, (40, 2048, 4), dtype=jnp.float32)
    y2 = time_mask(x2, k_mask2, min_mask_length=16, max_mask_length=128, prob=0.7)
    y2 = jax.block_until_ready(y2)
    y2_ref = _time_mask_reference(
        x2, k_mask2, min_mask_length=16, max_mask_length=128, prob=0.7
    )
    assert bool(jnp.array_equal(y2, y2_ref))

    # --- No-op short-circuit (default args: max_mask_length=0) ---------------
    y0 = time_mask(x1, k_mask1)
    assert bool(jnp.array_equal(jax.block_until_ready(y0), x1))

    print("KERNEL_OK")
</pallas_src>

<mosaic_0001>
module attributes {stable_mosaic.version = 11 : i64} {
  func.func @_time_mask_kernel(%arg0: i32, %arg1: i32, %arg2: memref<6x1xi32, #tpu.memory_space<vmem>>, %arg3: memref<6x1xi32, #tpu.memory_space<vmem>>, %arg4: memref<6x64xf32, #tpu.memory_space<vmem>>, %arg5: memref<6x64xf32, #tpu.memory_space<vmem>>) attributes {dimension_semantics = [#tpu.dimension_semantics<parallel>, #tpu.dimension_semantics<parallel>], iteration_bounds = array<i64: 1, 1>, scalar_prefetch = 0 : i64, scratch_operands = 0 : i64, tpu.core_type = #tpu.core_type<tc>, window_params = [{transform_indices = @transform_0, window_bounds = array<i64: 6, 1>}, {transform_indices = @transform_1, window_bounds = array<i64: 6, 1>}, {transform_indices = @transform_2, window_bounds = array<i64: 6, 64>}, {transform_indices = @transform_3, window_bounds = array<i64: 6, 64>}]} {
    %c64_i32 = arith.constant 64 : i32
    %0 = arith.muli %arg1, %c64_i32 : i32
    %1 = tpu.iota {dimensions = array<i32: 1>} : vector<6x64xi32>
    %2 = vector.broadcast %0 : i32 to vector<6x64xi32>
    %3 = arith.addi %2, %1 : vector<6x64xi32>
    %c0 = arith.constant 0 : index
    %c0_0 = arith.constant 0 : index
    %4 = vector.load %arg2[%c0, %c0_0] : memref<6x1xi32, #tpu.memory_space<vmem>>, vector<6x1xi32>
    %5 = vector.broadcast %4 : vector<6x1xi32> to vector<6x64xi32>
    %6 = arith.cmpi slt, %3, %5 : vector<6x64xi32>
    %c0_1 = arith.constant 0 : index
    %c0_2 = arith.constant 0 : index
    %7 = vector.load %arg3[%c0_1, %c0_2] : memref<6x1xi32, #tpu.memory_space<vmem>>, vector<6x1xi32>
    %8 = vector.broadcast %7 : vector<6x1xi32> to vector<6x64xi32>
    %9 = arith.cmpi sge, %3, %8 : vector<6x64xi32>
    %10 = arith.ori %6, %9 : vector<6x64xi1>
    %c0_3 = arith.constant 0 : index
    %c0_4 = arith.constant 0 : index
    %11 = vector.load %arg4[%c0_3, %c0_4] : memref<6x64xf32, #tpu.memory_space<vmem>>, vector<6x64xf32>
    %cst = arith.constant 0.000000e+00 : f32
    %12 = vector.broadcast %cst : f32 to vector<6x64xf32>
    %13 = arith.select %10, %11, %12 : vector<6x64xi1>, vector<6x64xf32>
    %c0_5 = arith.constant 0 : index
    %c0_6 = arith.constant 0 : index
    %14 = vector.load %arg5[%c0_5, %c0_6] : memref<6x64xf32, #tpu.memory_space<vmem>>, vector<6x64xf32>
    tpu.vector_store %arg5[%c0_5, %c0_6], %13 {strides = array<i32>} : memref<6x64xf32, #tpu.memory_space<vmem>>, vector<6x64xf32>,
    return
  }
  func.func @transform_0(%arg0: i32, %arg1: i32) -> (i32, i32) {
    %c0_i32 = arith.constant 0 : i32
    %c0_i32_0 = arith.constant 0 : i32
    return %arg0, %c0_i32 : i32, i32
  }
  func.func @transform_1(%arg0: i32, %arg1: i32) -> (i32, i32) {
    %c0_i32 = arith.constant 0 : i32
    %c0_i32_0 = arith.constant 0 : i32
    return %arg0, %c0_i32 : i32, i32
  }
  func.func @transform_2(%arg0: i32, %arg1: i32) -> (i32, i32) {
    %c0_i32 = arith.constant 0 : i32
    return %arg0, %arg1 : i32, i32
  }
  func.func @transform_3(%arg0: i32, %arg1: i32) -> (i32, i32) {
    %c0_i32 = arith.constant 0 : i32
    return %arg0, %arg1 : i32, i32
  }
}

</mosaic_0001>

<bundles_post_ra>
// kernel: time_mask.1
= control target key start
LH: loop header
LB: loop body
LE: loop exit
PB: predicated region body
PF: predicated region fallthrough
CT: control target
= control target key end

     0   :  { %v40_v0 = vmov 0   ;;  %v15_v4 = vlaneseq  ;;  %vm32_vm1 = vcmask 521216   ;;  %s73_s0 = inlined_call_operand.vmem [shape: s32[6,1], index: 0, kind: input, shape index: {}]   ;;  %s74_s1 = inlined_call_operand.vmem [shape: s32[6,1], index: 1, kind: input, shape index: {}]   ;;  %s75_s2 = inlined_call_operand.vmem [shape: f32[6,64], index: 2, kind: input, shape index: {}]   ;;  %s76_s3 = inlined_call_operand.vmem [shape: f32[6,64], index: 3, kind: output, shape index: {}]  }
   0x1   :  { %39 = vset.pattern.permute.xlu0 %v40_v0  ;;  %v19_v1 = vld [vmem:[%s73_s0] sm:$0x3f] }
   0x2   :  { %21 = vperm.xlu0 %39, %v19_v1   ;;  %v24_v2 = vld [vmem:[%s74_s1] sm:$0x3f]  ;;  %v16_v5 = vand.u32 127, %v15_v4 }
   0x3   :  { %v30_v6 = vld [vmem:[%s75_s2] sm:$0x3f] }
   0xa   :  { %26 = vperm.xlu0 %39, %v24_v2  }
  0x74   :  { %v22_v3 = vpop.permute.xlu0 %21 }
  0x75   :  { %vm23_vm0 = vcmp.lt.s32.totalorder %v16_v5, %v22_v3 }
  0x7c   :  { %v27_v7 = vpop.permute.xlu0 %26 }
  0x7d   :  { %vm28_vm2 = vcmp.ge.s32.totalorder %v16_v5, %v27_v7 }
  0x7e   :  { %vm29_vm3 = vmor %vm23_vm0, %vm28_vm2 }
  0x7f   :  { %v31_v8 = vsel %vm29_vm3, %v30_v6, 0.0 }
  0x80   :  { %33 = vst.msk [vmem:[%s76_s3] sm:$0x3f] %vm32_vm1, %v31_v8 }

</bundles_post_ra>
